<compile_context>
chip_gen: v6e
topology: v6e:2x2x1
jax: 0.10.0
libtpu: 0.0.40
codegen_flags: <defaults>
</compile_context>

<pallas_src>
import jax
import jax.numpy as jnp
import numpy as np
from jax.experimental import pallas as pl
from jax.experimental.pallas import tpu as pltpu

# ---------------- problem constants ----------------
CIN, COUT = 3, 64
KH, KW = 7, 7
STRIDE, PAD = 2, 5
POOL_K, POOL_S = 3, 2
EPS = 1e-5
K_RAW = CIN * KH * KW      # 147 (kept un-padded in HBM)


# ---------------- helpers ----------------
def _pick_thp(hp):
    """Pooled-row band height: a divisor of hp, <= 8, preferring >= 2 grid steps."""
    cap = 8 if hp > 8 else max(1, hp // 2)
    for d in range(min(cap, hp), 0, -1):
        if hp % d == 0:
            return d
    return 1


def _make_fused_kernel(thp, wh_pad, wp):
    """conv(7x7/s2)+BN+ReLU+maxpool(3x3/s2) for one (image, pooled-row band)."""
    w2 = 2 * wh_pad              # flattened (w_phase, w') width of one conv row
    nrow = 2 * thp + 1           # conv rows in the band: thp+1 even-phase + thp odd-phase
    w_tap_starts = (0, wh_pad, 1)  # pool W taps (wph, shift): (0,0), (1,0), (0,1)

    def kernel(p_ref, w_ref, shift_ref, o_ref):
        # p_ref:     (1, 1, nrow*w2, 147) bf16 patches, rows ordered (hph, h', wph, w')
        # w_ref:     (147, 64) bf16 weights with BN scale folded in
        # shift_ref: (1, 64) f32 folded conv-bias + BN shift
        # o_ref:     (1, thp, wp, 64) f32 pooled rows of this band
        acc = jnp.dot(p_ref[0, 0], w_ref[...], preferred_element_type=jnp.float32)
        act = jnp.maximum(acc + shift_ref[...], 0.0)             # (nrow*w2, 64)

        # Separable pool, W direction first: per conv row, max over the 3 W taps.
        wmax = []
        for r in range(nrow):
            row = act[r * w2:(r + 1) * w2, :]                    # (w2, 64)
            m = row[0:wp, :]
            for s in w_tap_starts[1:]:
                m = jnp.maximum(m, row[s:s + wp, :])
            wmax.append(m)                                       # (wp, 64)

        # H direction: pooled row j = max(even[j], odd[j], even[j+1]).
        for j in range(thp):
            row_max = jnp.maximum(jnp.maximum(wmax[j], wmax[thp + 1 + j]), wmax[j + 1])
            o_ref[0, j] = row_max

    return kernel


def _build_patches(xb, thp, hp, wp, wh_pad):
    """bf16 x (N,3,H,W) -> (N, n_bands, m_band, 147) phase-split banded im2col patches.

    Row order inside a band is (h_phase, h', w_phase, w'); only conv rows/cols that
    the pool actually reads are materialized, plus one duplicated even 'halo' conv
    row per band so bands are independent (no cross-step overlap for BlockSpec).
    """
    n = xb.shape[0]
    ho_u = 2 * hp + 1            # conv rows used by the pool: 0..2*hp
    wo_u = 2 * wp + 1            # conv cols used by the pool: 0..2*wp
    xp = jnp.pad(xb, ((0, 0), (0, 0), (PAD, PAD), (PAD, PAD)))

    cols = []
    for kh in range(KH):
        for kw in range(KW):
            cols.append(xp[:, :, kh:kh + 2 * ho_u - 1:2, kw:kw + 2 * wo_u - 1:2])
    pat = jnp.stack(cols, axis=-1)                    # (n, 3, ho_u, wo_u, 49)
    pat = jnp.transpose(pat, (0, 2, 3, 1, 4))         # (n, ho_u, wo_u, 3, 49)
    pat = pat.reshape(n, ho_u, wo_u, K_RAW)           # K order (c, kh, kw) == torch view

    # W phase split (w = 2*w' + wph); each phase zero-padded to wh_pad columns
    # (wh_pad is a multiple of 4 so band rows are 8-aligned and never read past wp+1).
    p0 = pat[:, :, 0::2, :]                           # (n, ho_u, wp+1, K)
    p1 = pat[:, :, 1::2, :]                           # (n, ho_u, wp,   K)
    p0 = jnp.pad(p0, ((0, 0), (0, 0), (0, wh_pad - (wp + 1)), (0, 0)))
    p1 = jnp.pad(p1, ((0, 0), (0, 0), (0, wh_pad - wp), (0, 0)))
    patw = jnp.stack([p0, p1], axis=2)                # (n, ho_u, 2, wh_pad, K)

    # H phase split + per-band duplication of the shared (halo) even conv row.
    pe = patw[:, 0::2]                                # even conv rows 0,2,..,2hp  (hp+1)
    po = patw[:, 1::2]                                # odd  conv rows 1,3,..,2hp-1 (hp)
    n_bands = hp // thp
    bands = []
    for bi in range(n_bands):
        ph0 = pe[:, bi * thp: bi * thp + thp + 1]     # thp+1 even rows (incl. halo)
        ph1 = po[:, bi * thp: bi * thp + thp]         # thp odd rows
        bands.append(jnp.concatenate([ph0, ph1], axis=1))  # (n, 2*thp+1, 2, wh_pad, K)
    pat_b = jnp.stack(bands, axis=1)                  # (n, n_bands, 2*thp+1, 2, wh_pad, K)
    m_band = (2 * thp + 1) * 2 * wh_pad
    return pat_b.reshape(n, n_bands, m_band, K_RAW)


# ---------------- forward (plain JAX glue fused under jit) ----------------
@jax.jit
def stage0_forward(x, params):
    """x: (N, 3, H, W) f32 NCHW -> (N, 64, Hp, Wp) f32 NCHW (BatchNorm in eval mode)."""
    w, b, gamma, beta, r_mean, r_var = params
    n, _, h, wdim = x.shape
    ho = (h + 2 * PAD - KH) // STRIDE + 1
    wo = (wdim + 2 * PAD - KW) // STRIDE + 1
    hp = (ho - POOL_K) // POOL_S + 1
    wp = (wo - POOL_K) // POOL_S + 1

    thp = _pick_thp(hp)                               # pooled rows per band
    n_bands = hp // thp
    wh_pad = -(-(wp + 1) // 4) * 4                    # W-phase width, multiple of 4
    m_band = (2 * thp + 1) * 2 * wh_pad

    # bf16 early so all patch-producer intermediates are half-width.
    patches = _build_patches(x.astype(jnp.bfloat16), thp, hp, wp, wh_pad)

    # Fold conv bias + BatchNorm (inference) into weights + a single shift.
    scale = gamma / jnp.sqrt(r_var + EPS)                               # (64,)
    shift = (beta + (b - r_mean) * scale).reshape(1, COUT).astype(jnp.float32)
    w2d = (jnp.transpose(w.reshape(COUT, K_RAW)) * scale[None, :]).astype(jnp.bfloat16)

    kernel = _make_fused_kernel(thp, wh_pad, wp)
    pooled = pl.pallas_call(
        kernel,
        out_shape=jax.ShapeDtypeStruct((n, hp, wp, COUT), jnp.float32),
        grid=(n, n_bands),
        in_specs=[
            pl.BlockSpec((1, 1, m_band, K_RAW), lambda i, j: (i, j, 0, 0)),
            pl.BlockSpec((K_RAW, COUT), lambda i, j: (0, 0)),
            pl.BlockSpec((1, COUT), lambda i, j: (0, 0)),
        ],
        out_specs=pl.BlockSpec((1, thp, wp, COUT), lambda i, j: (i, j, 0, 0)),
        compiler_params=pltpu.CompilerParams(
            dimension_semantics=("parallel", "parallel"),
            vmem_limit_bytes=32 * 1024 * 1024),
    )(patches, w2d, shift)

    # TODO(synk): assemble the 147-wide patches inside the kernel from the padded
    # input (manual row-band DMA) to remove the remaining patch-matrix HBM round trip.
    return jnp.transpose(pooled, (0, 3, 1, 2))        # NHWC -> NCHW


def reference_forward(x, params):
    """Pure-JAX reference of the PyTorch module (BN in eval mode)."""
    w, b, gamma, beta, r_mean, r_var = params
    conv = jax.lax.conv_general_dilated(
        x, w, window_strides=(STRIDE, STRIDE),
        padding=[(PAD, PAD), (PAD, PAD)],
        dimension_numbers=("NCHW", "OIHW", "NCHW"),
    ) + b[None, :, None, None]
    bn = (conv - r_mean[None, :, None, None]) / jnp.sqrt(r_var + EPS)[None, :, None, None]
    bn = bn * gamma[None, :, None, None] + beta[None, :, None, None]
    relu = jnp.maximum(bn, 0.0)
    pooled = jax.lax.reduce_window(
        relu, -jnp.inf, jax.lax.max,
        window_dimensions=(1, 1, POOL_K, POOL_K),
        window_strides=(1, 1, POOL_S, POOL_S),
        padding="VALID",
    )
    return pooled


if __name__ == "__main__":
    key = jax.random.PRNGKey(0)
    k_x, k_w, k_b, k_g, k_be, k_m, k_v = jax.random.split(key, 7)

    # Small input consistent with the module: NCHW, 3 input channels.
    x = jax.random.normal(k_x, (2, 3, 16, 16), dtype=jnp.float32)

    # Deterministic synthetic parameters (shapes from nn.Conv2d / nn.BatchNorm2d).
    # BatchNorm is implemented in inference (eval) mode with these running stats.
    w = jax.random.normal(k_w, (COUT, CIN, KH, KW), dtype=jnp.float32) * 0.1
    b = jax.random.normal(k_b, (COUT,), dtype=jnp.float32) * 0.1
    gamma = jax.random.uniform(k_g, (COUT,), minval=0.5, maxval=1.5, dtype=jnp.float32)
    beta = jax.random.normal(k_be, (COUT,), dtype=jnp.float32) * 0.1
    r_mean = jax.random.normal(k_m, (COUT,), dtype=jnp.float32) * 0.1
    r_var = jax.random.uniform(k_v, (COUT,), minval=0.5, maxval=1.5, dtype=jnp.float32)
    params = (w, b, gamma, beta, r_mean, r_var)

    out = jax.block_until_ready(stage0_forward(x, params))
    ref = jax.block_until_ready(reference_forward(x, params))

    assert out.shape == (2, 64, 4, 4), out.shape
    # bf16 patches/weights with f32 accumulation -> slightly looser tolerance.
    np.testing.assert_allclose(np.asarray(out), np.asarray(ref), rtol=2e-2, atol=5e-2)
    print("KERNEL_OK")
</pallas_src>

<mosaic_0001>
module attributes {stable_mosaic.version = 11 : i64} {
  func.func @kernel(%arg0: i32, %arg1: i32, %arg2: memref<1x1x80x147xbf16, #tpu.memory_space<vmem>>, %arg3: memref<147x64xbf16, #tpu.memory_space<vmem>>, %arg4: memref<1x64xf32, #tpu.memory_space<vmem>>, %arg5: memref<1x2x4x64xf32, #tpu.memory_space<vmem>>) attributes {dimension_semantics = [#tpu.dimension_semantics<parallel>, #tpu.dimension_semantics<parallel>], iteration_bounds = array<i64: 2, 2>, scalar_prefetch = 0 : i64, scratch_operands = 0 : i64, tpu.core_type = #tpu.core_type<tc>, window_params = [{transform_indices = @transform_0, window_bounds = array<i64: 1, 1, 80, 147>}, {pipeline_mode = #tpu.pipeline_mode<synchronous>, transform_indices = @transform_1, window_bounds = array<i64: 147, 64>}, {pipeline_mode = #tpu.pipeline_mode<synchronous>, transform_indices = @transform_2, window_bounds = array<i64: 1, 64>}, {transform_indices = @transform_3, window_bounds = array<i64: 1, 2, 4, 64>}]} {
    %c0 = arith.constant 0 : index
    %c0_0 = arith.constant 0 : index
    %c0_1 = arith.constant 0 : index
    %c0_2 = arith.constant 0 : index
    %0 = vector.load %arg2[%c0, %c0_0, %c0_1, %c0_2] : memref<1x1x80x147xbf16, #tpu.memory_space<vmem>>, vector<1x1x80x147xbf16>
    %1 = vector.shape_cast %0 : vector<1x1x80x147xbf16> to vector<80x147xbf16>
    %c0_3 = arith.constant 0 : index
    %c0_4 = arith.constant 0 : index
    %2 = vector.load %arg3[%c0_3, %c0_4] : memref<147x64xbf16, #tpu.memory_space<vmem>>, vector<147x64xbf16>
    %cst = arith.constant dense<0.000000e+00> : vector<80x64xf32>
    %3 = tpu.matmul %1, %2, %cst {dimension_numbers = #tpu.dot_dimension_numbers<[1], [0], [0], [1], [0, 0, 1, 1], [], []>} : vector<80x147xbf16>, vector<147x64xbf16>, vector<80x64xf32> -> vector<80x64xf32>
    %c0_5 = arith.constant 0 : index
    %c0_6 = arith.constant 0 : index
    %4 = vector.load %arg4[%c0_5, %c0_6] : memref<1x64xf32, #tpu.memory_space<vmem>>, vector<1x64xf32>
    %5 = vector.broadcast %4 : vector<1x64xf32> to vector<80x64xf32>
    %6 = arith.addf %3, %5 : vector<80x64xf32>
    %cst_7 = arith.constant 0.000000e+00 : f32
    %7 = vector.broadcast %cst_7 : f32 to vector<80x64xf32>
    %8 = arith.maximumf %6, %7 : vector<80x64xf32>
    %9 = vector.extract_strided_slice %8 {offsets = [0, 0], sizes = [16, 64], strides = [1, 1]} : vector<80x64xf32> to vector<16x64xf32>
    %10 = vector.extract_strided_slice %9 {offsets = [0, 0], sizes = [4, 64], strides = [1, 1]} : vector<16x64xf32> to vector<4x64xf32>
    %11 = vector.extract_strided_slice %9 {offsets = [8, 0], sizes = [4, 64], strides = [1, 1]} : vector<16x64xf32> to vector<4x64xf32>
    %12 = arith.maximumf %10, %11 : vector<4x64xf32>
    %13 = vector.extract_strided_slice %9 {offsets = [1, 0], sizes = [4, 64], strides = [1, 1]} : vector<16x64xf32> to vector<4x64xf32>
    %14 = arith.maximumf %12, %13 : vector<4x64xf32>
    %15 = vector.extract_strided_slice %8 {offsets = [16, 0], sizes = [16, 64], strides = [1, 1]} : vector<80x64xf32> to vector<16x64xf32>
    %16 = vector.extract_strided_slice %15 {offsets = [0, 0], sizes = [4, 64], strides = [1, 1]} : vector<16x64xf32> to vector<4x64xf32>
    %17 = vector.extract_strided_slice %15 {offsets = [8, 0], sizes = [4, 64], strides = [1, 1]} : vector<16x64xf32> to vector<4x64xf32>
    %18 = arith.maximumf %16, %17 : vector<4x64xf32>
    %19 = vector.extract_strided_slice %15 {offsets = [1, 0], sizes = [4, 64], strides = [1, 1]} : vector<16x64xf32> to vector<4x64xf32>
    %20 = arith.maximumf %18, %19 : vector<4x64xf32>
    %21 = vector.extract_strided_slice %8 {offsets = [32, 0], sizes = [16, 64], strides = [1, 1]} : vector<80x64xf32> to vector<16x64xf32>
    %22 = vector.extract_strided_slice %21 {offsets = [0, 0], sizes = [4, 64], strides = [1, 1]} : vector<16x64xf32> to vector<4x64xf32>
    %23 = vector.extract_strided_slice %21 {offsets = [8, 0], sizes = [4, 64], strides = [1, 1]} : vector<16x64xf32> to vector<4x64xf32>
    %24 = arith.maximumf %22, %23 : vector<4x64xf32>
    %25 = vector.extract_strided_slice %21 {offsets = [1, 0], sizes = [4, 64], strides = [1, 1]} : vector<16x64xf32> to vector<4x64xf32>
    %26 = arith.maximumf %24, %25 : vector<4x64xf32>
    %27 = vector.extract_strided_slice %8 {offsets = [48, 0], sizes = [16, 64], strides = [1, 1]} : vector<80x64xf32> to vector<16x64xf32>
    %28 = vector.extract_strided_slice %27 {offsets = [0, 0], sizes = [4, 64], strides = [1, 1]} : vector<16x64xf32> to vector<4x64xf32>
    %29 = vector.extract_strided_slice %27 {offsets = [8, 0], sizes = [4, 64], strides = [1, 1]} : vector<16x64xf32> to vector<4x64xf32>
    %30 = arith.maximumf %28, %29 : vector<4x64xf32>
    %31 = vector.extract_strided_slice %27 {offsets = [1, 0], sizes = [4, 64], strides = [1, 1]} : vector<16x64xf32> to vector<4x64xf32>
    %32 = arith.maximumf %30, %31 : vector<4x64xf32>
    %33 = vector.extract_strided_slice %8 {offsets = [64, 0], sizes = [16, 64], strides = [1, 1]} : vector<80x64xf32> to vector<16x64xf32>
    %34 = vector.extract_strided_slice %33 {offsets = [0, 0], sizes = [4, 64], strides = [1, 1]} : vector<16x64xf32> to vector<4x64xf32>
    %35 = vector.extract_strided_slice %33 {offsets = [8, 0], sizes = [4, 64], strides = [1, 1]} : vector<16x64xf32> to vector<4x64xf32>
    %36 = arith.maximumf %34, %35 : vector<4x64xf32>
    %37 = vector.extract_strided_slice %33 {offsets = [1, 0], sizes = [4, 64], strides = [1, 1]} : vector<16x64xf32> to vector<4x64xf32>
    %38 = arith.maximumf %36, %37 : vector<4x64xf32>
    %39 = arith.maximumf %14, %32 : vector<4x64xf32>
    %40 = arith.maximumf %39, %20 : vector<4x64xf32>
    %c0_8 = arith.constant 0 : index
    %c0_9 = arith.constant 0 : index
    %c0_10 = arith.constant 0 : index
    %c0_11 = arith.constant 0 : index
    %41 = vector.load %arg5[%c0_8, %c0_9, %c0_10, %c0_11] : memref<1x2x4x64xf32, #tpu.memory_space<vmem>>, vector<1x1x4x64xf32>
    %42 = vector.shape_cast %41 : vector<1x1x4x64xf32> to vector<4x64xf32>
    %43 = vector.shape_cast %40 : vector<4x64xf32> to vector<1x1x4x64xf32>
    tpu.vector_store %arg5[%c0_8, %c0_9, %c0_10, %c0_11], %43 {strides = array<i32>} : memref<1x2x4x64xf32, #tpu.memory_space<vmem>>, vector<1x1x4x64xf32>,
    %44 = arith.maximumf %20, %38 : vector<4x64xf32>
    %45 = arith.maximumf %44, %26 : vector<4x64xf32>
    %c0_12 = arith.constant 0 : index
    %c1 = arith.constant 1 : index
    %c0_13 = arith.constant 0 : index
    %c0_14 = arith.constant 0 : index
    %46 = vector.load %arg5[%c0_12, %c1, %c0_13, %c0_14] : memref<1x2x4x64xf32, #tpu.memory_space<vmem>>, vector<1x1x4x64xf32>
    %47 = vector.shape_cast %46 : vector<1x1x4x64xf32> to vector<4x64xf32>
    %48 = vector.shape_cast %45 : vector<4x64xf32> to vector<1x1x4x64xf32>
    tpu.vector_store %arg5[%c0_12, %c1, %c0_13, %c0_14], %48 {strides = array<i32>} : memref<1x2x4x64xf32, #tpu.memory_space<vmem>>, vector<1x1x4x64xf32>,
    return
  }
  func.func @transform_0(%arg0: i32, %arg1: i32) -> (i32, i32, i32, i32) {
    %c0_i32 = arith.constant 0 : i32
    %c0_i32_0 = arith.constant 0 : i32
    %c0_i32_1 = arith.constant 0 : i32
    return %arg0, %arg1, %c0_i32, %c0_i32_0 : i32, i32, i32, i32
  }
  func.func @transform_1(%arg0: i32, %arg1: i32) -> (i32, i32) {
    %c0_i32 = arith.constant 0 : i32
    %c0_i32_0 = arith.constant 0 : i32
    %c0_i32_1 = arith.constant 0 : i32
    return %c0_i32, %c0_i32_0 : i32, i32
  }
  func.func @transform_2(%arg0: i32, %arg1: i32) -> (i32, i32) {
    %c0_i32 = arith.constant 0 : i32
    %c0_i32_0 = arith.constant 0 : i32
    %c0_i32_1 = arith.constant 0 : i32
    return %c0_i32, %c0_i32_0 : i32, i32
  }
  func.func @transform_3(%arg0: i32, %arg1: i32) -> (i32, i32, i32, i32) {
    %c0_i32 = arith.constant 0 : i32
    %c0_i32_0 = arith.constant 0 : i32
    %c0_i32_1 = arith.constant 0 : i32
    return %arg0, %arg1, %c0_i32, %c0_i32_0 : i32, i32, i32, i32
  }
}

</mosaic_0001>

<bundles_post_ra>
// kernel: stage0_forward.1
= control target key start
LH: loop header
LB: loop body
LE: loop exit
PB: predicated region body
PF: predicated region fallthrough
CT: control target
= control target key end

     0   :  { %8 = vsyncpa [#allocation3], 0  ;;  %s1073_s0 = inlined_call_operand.vmem [shape: bf16[2,2,80,147], index: 0, kind: input, shape index: {}]   ;;  %s1074_s1 = inlined_call_operand.vmem [shape: bf16[147,64], index: 1, kind: input, shape index: {}]   ;;  %s1075_s2 = inlined_call_operand.vmem [shape: f32[1,64], index: 2, kind: input, shape index: {}]   ;;  %s1076_s3 = inlined_call_operand.hbm [shape: f32[2,4,4,64], index: 3, kind: output, shape index: {}]  }
   0x1   :  { %10 = vsyncpa [#allocation3 + $0x1], 0  ;;  %s858_s12 = smov 0   ;;  %s860_s13 = smov 0  }
   0x2   :  { %s862_s14 = smov 0   ;;  %s864_s15 = smov 0  }
   0x3   :  { %s866_s16 = smov 0   ;;  %s868_s17 = smov 0  }
   0x4   :  { %s870_s18 = smov 0   ;;  %s872_s19 = smov 0  }
   0x5 LB: > { %s577_s20 = sadd.s32 4294967295, %s831_s19   ;;  %s578_s21 = sadd.s32 4294967294, %s831_s19   ;;  %s831_s19 = sphi %s872_s19, %s16_s19   ;;  %s827_s18 = sphi %s870_s18, %s1085_s18   ;;  %s823_s17 = sphi %s868_s17, %s1084_s17   ;;  %s819_s16 = sphi %s866_s16, %s1083_s16   ;;  %s815_s15 = sphi %s864_s15, %s1082_s15   ;;  %s811_s14 = sphi %s862_s14, %s1081_s14   ;;  %s807_s13 = sphi %s860_s13, %s1080_s13   ;;  %s803_s12 = sphi %s858_s12, %s1079_s12  }
   0x6   : > { %s25_s22 = sadd.s32 1, %s823_s17  ;;  %s28_s23 = sadd.s32 1, %s827_s18 }
   0x7   : > { %p26_p0 = scmp.ge.s32.totalorder %s25_s22, 2  ;;  %p117_p1 = scmp.ne.s32.totalorder %s811_s14, %s807_s13 }
   0x8   : > { %p118_p2 = scmp.eq.s32.totalorder %s577_s20, 3  ;;  %p123_p5 = scmp.ne.s32.totalorder %s807_s13, %s803_s12 }
   0x9   : > { %s1087_s22 = smov (%p26_p0, %s25_s22), 0  ;;  %s1089_s23 = smov (!%p26_p0, %s28_s23), %s827_s18 }
   0xa   : > { %s103_s24 = ssub.s32 %s823_s17, %s1087_s22  ;;  %p909_p3 = por %p118_p2, %p117_p1 }
   0xb   : > { %p30_p4 = scmp.ge.s32.totalorder %s1089_s23, 2  ;;  %p124_p6 = scmp.eq.s32.totalorder %s578_s21, 3 }
   0xc   : > { %p581_p7 = scmp.ge.s32.totalorder %s831_s19, 1  ;;  %p160_p9 = scmp.lt.s32.totalorder %s831_s19, 5 }
   0xd   : > { %s1091_s23 = smov (%p30_p4, %s1089_s23), 0  ;;  %p918_p8 = por %p124_p6, %p123_p5 }
   0xe   : > { %s102_s27 = ssub.s32 %s827_s18, %s1091_s23  ;;  %s107_s28 = sadd.s32 1, %s811_s14 }
   0xf   : > { %s104_s29 = sor.u32 %s103_s24, %s102_s27  ;;  %p161_p10 = pnand %p581_p7, %p160_p9 }
  0x10   : > { %p105_p11 = scmp.eq.s32.totalorder %s104_s29, 0  ;;  %p188_p12 = scmp.lt.s32.totalorder (!%p161_p10), %s819_s16, 1 }
  0x11   : > { %164 = sbr.rel (%p161_p10) target bundleno = 300 (0x12c), region = 32  ;;  %p190_p13 = scmp.lt.s32.totalorder (!%p161_p10), %s815_s15, 1 }
  0x12   : > { %s927_s30 = scalar_select %p105_p11, %s811_s14, %s107_s28  }
  0x13   : > { %s185_s7 = sand.u32 (!%p161_p10), 1, %s807_s13   ;;  %s612_s9 = sshll.u32 (!%p161_p10), %s815_s15, 1 }
  0x14   : > { %s1022_s28 = scalar_lea.sflag (!%p161_p10), [#allocation3], %s185_s7 }
  0x16   : > { %v714_v0 = vld [vmem:[%s1074_s1 + $0x38] sm:$0xff]   ;;  %v833_v1 = vmov 0   ;;  %v715_v2 = vld [vmem:[%s1074_s1 + $0x30] sm:$0xff]   ;;  %v716_v3 = vld [vmem:[%s1074_s1 + $0x28] sm:$0xff]   ;;  %s189_s10 = scalar_select %p188_p12, %s819_s16, 1  ;;  %vm337_vm0 = vcmask 154624  }
  0x17   : > { %360 = vmatprep.subr.bf16.mxu0 %v833_v1  ;;  %617 = vmatprep.subr.bf16.mxu1 %v833_v1  ;;  %v717_v4 = vld [vmem:[%s1074_s1 + $0x20] sm:$0xff]   ;;  %s191_s21 = scalar_select %p190_p13, %s815_s15, 1  ;;  %v718_v5 = vld [vmem:[%s1074_s1 + $0x18] sm:$0xff]   ;;  %v719_v6 = vld [vmem:[%s1074_s1 + $0x10] sm:$0xff]   ;;  %vm353_vm1 = vcmask 1040384   ;;  %vm354_vm2 = vcmask 1041408  }
  0x18   : > { %361 = vmatpush1.bf16.msra.mxu0 %v714_v0  ;;  %627 = vmatpush1.bf16.msra.mxu1 %v714_v0  ;;  %s638_s24 = smul.u32 40, %s189_s10  ;;  %v720_v9 = vld [vmem:[%s1074_s1 + $0x8] sm:$0xff]   ;;  %v834_v10 = vmov 65535   ;;  %v721_v12 = vld [vmem:[%s1074_s1] sm:$0xff]   ;;  %s613_s10 = sshll.u32 %s819_s16, 2  ;;  %vm470_vm3 = vcmask 519168  }
  0x19   : > { %362 = vmatprep.subr.bf16.mxu0 %v833_v1  ;;  %618 = vmatprep.subr.bf16.mxu1 %v833_v1  ;;  %s637_s27 = smul.u32 20, %s191_s21  ;;  %v355_v11 = vsel %vm353_vm1, 4294967295, %v834_v10  ;;  %v722_v13 = vld [vmem:[%s1074_s1 + $0x48] ss:$0 sps:$4 sm:$0x33]   ;;  %v723_v16 = vld [vmem:[%s1074_s1 + $0x40] sm:$0xff]   ;;  %s489_s11 = sadd.s32 %s613_s10, %s612_s9 }
  0x1a   : > { %v356_v14 = vsel %vm354_vm2, %v355_v11, 0  ;;  %v584_v27 = vld [vmem:[%s1075_s2] ss:$0 sm:$0xff]  ;;  %s614_s21 = sshll.u32 %s489_s11, 6 }
  0x1b   : > { %s194_s4 = sadd.s32 %s638_s24, %s637_s27  ;;  %v358_v15 = vand.u32 %v722_v13, %v356_v14  ;;  %s1015_s27 = scalar_lea.hbm %s1076_s3, %s614_s21 }
  0x1c   : > { %363 = vmatpush1.bf16.msra.mxu0 %v715_v2  ;;  %628 = vmatpush1.bf16.msra.mxu1 %v715_v2  ;;  %s583_s5 = sshll.u32 %s194_s4, 2  ;;  %s835_s4 = smov [#allocation2]  }
  0x1d   : > { %364 = vmatprep.subr.bf16.mxu0 %v833_v1  ;;  %619 = vmatprep.subr.bf16.mxu1 %v833_v1  ;;  %s961_s8 = scalar_lea.vmem %s1073_s0, %s583_s5  ;;  %s743_s5 = sshll.u32 %s835_s4, 4  ;;  %s744_s5 = int_to_ptr.vmem [resolvable:$false] %s743_s5 }
  0x1e   : > { %v726_v7 = vld [vmem:[%s961_s8 + $0x4] ss:$8 sps:$4 sm:$0xff]   ;;  %v729_v8 = vld [vmem:[%s961_s8 + $0x34] ss:$8 sps:$4 sm:$0xff]   ;;  %v724_v17 = vld [vmem:[%s961_s8] ss:$8 sps:$4 sm:$0xff]  }
  0x1f   : > { %605 = vmatprep.mubr.msk.bf16.mxu0 %vm337_vm0, %v726_v7  ;;  %608 = vmatprep.mubr.msk.bf16.mxu1 %vm337_vm0, %v729_v8  ;;  %v727_v18 = vld [vmem:[%s961_s8 + $0x30] ss:$8 sps:$4 sm:$0xff]   ;;  %v730_v19 = vld [vmem:[%s961_s8 + $0x14] ss:$8 sps:$4 sm:$0xff]   ;;  %v732_v20 = vld [vmem:[%s961_s8 + $0x44] ss:$8 sps:$4 sm:$0xff]  }
  0x20   : > { %365 = vmatpush1.bf16.msra.mxu0 %v716_v3  ;;  %629 = vmatpush1.bf16.msra.mxu1 %v716_v3  ;;  %v734_v21 = vld [vmem:[%s961_s8 + $0x10] ss:$8 sps:$4 sm:$0xff]   ;;  %v735_v22 = vld [vmem:[%s961_s8 + $0x40] ss:$8 sps:$4 sm:$0xff]   ;;  %v736_v23 = vld [vmem:[%s961_s8 + $0x24] ss:$8 sps:$4 sm:$0xff]  }
  0x21   : > { %366 = vmatprep.subr.bf16.mxu0 %v833_v1  ;;  %620 = vmatprep.subr.bf16.mxu1 %v833_v1  ;;  %v738_v24 = vld [vmem:[%s961_s8 + $0x20] ss:$8 sps:$4 sm:$0xff]   ;;  %s582_s8 = sshll.u32 %s185_s7, 3  ;;  %s745_s6 = scalar_lea.vmem %s744_s5, 256 }
  0x22   : > { %s187_s20 = scalar_lea.vmem [#allocation2], %s582_s8 }
  0x23   : > { %s492_s24 = sshll.u32 %s187_s20, 4  ;;  %s1017_s24 = int_to_ptr.vmem [resolvable:$true] %s492_s24 }
  0x24   : > { %367 = vmatpush1.bf16.msra.mxu0 %v717_v4  ;;  %630 = vmatpush1.bf16.msra.mxu1 %v717_v4  ;;  %s739_s29 = scalar_lea.vmem %s1017_s24, 128  ;;  %p746_p4 = scmp.lt.s32.totalorder %s1017_s24, %s744_s5 }
  0x25   : > { %368 = vmatprep.subr.bf16.mxu0 %v833_v1  ;;  %621 = vmatprep.subr.bf16.mxu1 %v833_v1  ;;  %p740_p0 = scmp.ne.s32.totalorder %s1017_s24, %s739_s29  ;;  %p747_p5 = scmp.lt.s32.totalorder %s745_s6, %s739_s29 }
  0x27   : > { %p741_p1 = pnand %p740_p0, %p909_p3  ;;  %p748_p6 = por %p747_p5, %p746_p4 }
  0x28   : > { %369 = vmatpush1.bf16.msra.mxu0 %v718_v5  ;;  %631 = vmatpush1.bf16.msra.mxu1 %v718_v5 }
  0x29   : > { %370 = vmatprep.subr.bf16.mxu0 %v833_v1  ;;  %622 = vmatprep.subr.bf16.mxu1 %v833_v1  ;;  %p742_p2 = pneg %p741_p1 }
  0x2b   : > { %p749_p7 = pnand %p748_p6, %p742_p2 }
  0x2c   : > { %371 = vmatpush1.bf16.msra.mxu0 %v719_v6  ;;  %632 = vmatpush1.bf16.msra.mxu1 %v719_v6 }
  0x2d   : > { %372 = vmatprep.subr.bf16.mxu0 %v833_v1  ;;  %623 = vmatprep.subr.bf16.mxu1 %v833_v1 }
  0x30   : > { %373 = vmatpush1.bf16.msra.mxu0 %v720_v9  ;;  %633 = vmatpush1.bf16.msra.mxu1 %v720_v9 }
  0x31   : > { %374 = vmatprep.subr.bf16.mxu0 %v833_v1  ;;  %624 = vmatprep.subr.bf16.mxu1 %v833_v1 }
  0x34   : > { %375 = vmatpush1.bf16.msra.mxu0 %v721_v12  ;;  %634 = vmatpush1.bf16.msra.mxu1 %v721_v12 }
  0x35   : > { %388 = vmatprep.subr.bf16.mxu0 %v833_v1  ;;  %625 = vmatprep.subr.bf16.mxu1 %v833_v1 }
  0x38   : > { %389 = vmatpush2.bf16.msra.mxu0 %v358_v15  ;;  %635 = vmatpush2.bf16.msra.mxu1 %v358_v15 }
  0x39   : > { %390 = vmatprep.subr.bf16.mxu0 %v833_v1  ;;  %626 = vmatprep.subr.bf16.mxu1 %v833_v1 }
  0x3c   : > { %391 = vmatpush2.bf16.msra.mxu0 %v723_v16  ;;  %636 = vmatpush2.bf16.msra.mxu1 %v723_v16 }
  0x3f   : > { %393 = vmatmul.mubr.bf16.vlgmr.msra.gmra.mxu0 %v724_v17  ;;  %417 = vmatmul.mubr.bf16.vlgmr.msra.gmra.mxu1 %v727_v18 }
  0x40   : > { %606 = vmatprep.mubr.msk.bf16.mxu0 %vm337_vm0, %v730_v19  ;;  %609 = vmatprep.mubr.msk.bf16.mxu1 %vm337_vm0, %v732_v20 }
  0x47   : > { %401 = vmatmul.mubr.bf16.gmra.mxu0 %v734_v21  ;;  %425 = vmatmul.mubr.bf16.gmra.mxu1 %v735_v22 }
  0x48   : > { %607 = vmatprep.mubr.msk.bf16.mxu0 %vm337_vm0, %v736_v23 }
  0x4f   : > { %409 = vmatmul.mubr.bf16.gmra.mxu0 %v738_v24 }
  0xff   : > { %v394_v25 = vpop.f32.mrf.mxu0  ;;  %v418_v26 = vpop.f32.mrf.mxu1 }
 0x100   : > { %v419_v30 = vadd.f32 %v584_v27, %v418_v26  ;;  %v395_v33 = vadd.f32 %v584_v27, %v394_v25 }
 0x101   : > { %v396_v28 = vpop.f32.mrf.mxu0  ;;  %v420_v29 = vpop.f32.mrf.mxu1 }
 0x102   : > { %v439_v38 = vmax.f32 %v419_v30, 0.0  ;;  %v433_v43 = vmax.f32 %v395_v33, 0.0 }
 0x103   : > { %v397_v31 = vpop.f32.mrf.mxu0  ;;  %v421_v32 = vpop.f32.mrf.mxu1 }
 0x104   : > { %v398_v34 = vadd.f32 %v584_v27, %v397_v31  ;;  %v422_v35 = vadd.f32 %v584_v27, %v421_v32  ;;  %v460_v47 = vrot.slane %v439_v38, 1  ;;  %v445_v53 = vrot.slane %v433_v43, 1 }
 0x105   : > { %v399_v36 = vpop.f32.mrf.mxu0  ;;  %v423_v37 = vpop.f32.mrf.mxu1 }
 0x106   : > { %v434_v39 = vmax.f32 %v398_v34, 0.0  ;;  %v440_v40 = vmax.f32 %v422_v35, 0.0 }
 0x107   : > { %v402_v41 = vpop.f32.mrf.mxu0  ;;  %v426_v42 = vpop.f32.mrf.mxu1 }
 0x108   : > { %v403_v44 = vadd.f32 %v584_v27, %v402_v41  ;;  %v443_v48 = vmax.f32 %v433_v43, %v434_v39  ;;  %v458_v49 = vmax.f32 %v439_v38, %v440_v40  ;;  %v427_v50 = vadd.f32 %v584_v27, %v426_v42 }
 0x109   : > { %v404_v45 = vpop.f32.mrf.mxu0  ;;  %v428_v46 = vpop.f32.mrf.mxu1 }
 0x10a   : > { %v435_v54 = vmax.f32 %v403_v44, 0.0  ;;  %v447_v59 = vmax.f32 %v443_v48, %v445_v53  ;;  %v462_v60 = vmax.f32 %v458_v49, %v460_v47  ;;  %v441_v61 = vmax.f32 %v427_v50, 0.0 }
 0x10b   : > { %v405_v51 = vpop.f32.mrf.mxu0  ;;  %v429_v52 = vpop.f32.mrf.mxu1 }
 0x10c   : > { %v406_v55 = vadd.f32 %v584_v27, %v405_v51  ;;  %v430_v56 = vadd.f32 %v584_v27, %v429_v52  ;;  %v450_v1 = vrot.slane %v435_v54, 1  ;;  %v468_v5 = vmax.f32 %v447_v59, %v462_v60 }
 0x10d   : > { %v407_v57 = vpop.f32.mrf.mxu0  ;;  %v431_v58 = vpop.f32.mrf.mxu1  ;;  %v465_v6 = vrot.slane %v441_v61, 1 }
 0x10e   : > { %v436_v62 = vmax.f32 %v406_v55, 0.0  ;;  %v442_v63 = vmax.f32 %v430_v56, 0.0 }
 0x10f   : > { %v410_v0 = vpop.f32.mrf.mxu0 }
 0x110   : > { %v448_v2 = vmax.f32 %v435_v54, %v436_v62  ;;  %v411_v3 = vadd.f32 %v584_v27, %v410_v0  ;;  %v463_v8 = vmax.f32 %v441_v61, %v442_v63 }
 0x111   : > { %v412_v4 = vpop.f32.mrf.mxu0 }
 0x112   : > { %v452_v7 = vmax.f32 %v448_v2, %v450_v1  ;;  %v437_v11 = vmax.f32 %v411_v3, 0.0  ;;  %v467_v14 = vmax.f32 %v463_v8, %v465_v6 }
 0x113   : > { %v413_v9 = vpop.f32.mrf.mxu0 }
 0x114   : > { %v469_v10 = vmax.f32 %v468_v5, %v452_v7  ;;  %v414_v12 = vadd.f32 %v584_v27, %v413_v9  ;;  %v455_v16 = vrot.slane %v437_v11, 1  ;;  %v472_v18 = vmax.f32 %v452_v7, %v467_v14 }
 0x115   : > { %v415_v13 = vpop.f32.mrf.mxu0 }
 0x116   : > { %471 = vst.msk [vmem:[%s187_s20] sm:$0xf] %vm470_vm3, %v469_v10  ;;  %v438_v15 = vmax.f32 %v414_v12, 0.0 }
 0x118   : > { %v453_v17 = vmax.f32 %v437_v11, %v438_v15 }
 0x11a   : > { %v457_v19 = vmax.f32 %v453_v17, %v455_v16 }
 0x11c   : > { %v473_v20 = vmax.f32 %v472_v18, %v457_v19 }
 0x11e   : > { %610 = vst.msk [vmem:[%s187_s20 + $0x4] sm:$0xf] %vm470_vm3, %v473_v20 }
 0x11f   : > { %752 = shalt.err (!%p749_p7)
}
 0x120   : > { %s753_s7 = scalar_lea.hbm %s1015_s27, 128  ;;  %s757_s10 = scalar_lea.hbm %s1076_s3, 512 }
 0x121   : > { %p754_p9 = scmp.ne.s32.totalorder %s1015_s27, %s753_s7  ;;  %p758_p12 = scmp.lt.s32.totalorder %s1015_s27, %s1076_s3 }
 0x122   : > { %p759_p13 = scmp.lt.s32.totalorder %s757_s10, %s753_s7 }
 0x123   : > { %p755_p10 = pnand %p754_p9, %p909_p3 }
 0x124   : > { %p760_p0 = por %p759_p13, %p758_p12 }
 0x125   : > { %p756_p11 = pneg %p755_p10 }
 0x127   : > { %p761_p1 = pnand %p760_p0, %p756_p11 }
 0x129   : > { %764 = shalt.err (!%p761_p1)
}
 0x12a   : > { %s836_s21 = smov 64   ;;  %s837_s15 = smov 4  }
 0x12b   : > { %639 = dma.vmem_to_hbm [thread:$0]  (%p909_p3), %s1017_s24, 128, %s1015_s27, %s1022_s28, %s836_s21, %s836_s21, %s837_s15  }
 0x12c PF: > { %p645_p2 = scmp.ge.s32.totalorder %s831_s19, 2  ;;  %s507_s16 = sand.u32 1, %s803_s12  }
 0x12d   : > { %s508_s29 = scalar_lea.sflag [#allocation3], %s507_s16 }
 0x12e   : > { %p642_p4 = pnand %p645_p2, %p918_p8 }
 0x130   : > { %p643_p5 = pneg %p642_p4 }
 0x132   : > { %798 = dma.done.wait (%p643_p5), %s508_s29, 128  }
 0x133   : > { %800 = vsyncadd (%p643_p5), %s508_s29, 4294967168  ;;  %s16_s19 = sadd.s32 1, %s831_s19   ;;  %s1079_s12 = smov %s807_s13 }
 0x134   : > { %p13_p6 = scmp.ge.s32.totalorder %s16_s19, 6   ;;  %s1080_s13 = smov %s811_s14 }
 0x135   : > { %s1081_s14 = smov %s927_s30  ;;  %s1082_s15 = smov %s823_s17 }
 0x136   : > { %s1083_s16 = smov %s827_s18  ;;  %s1084_s17 = smov %s1087_s22 }
 0x137   : > { %s1085_s18 = smov %s1091_s23  ;;  %15 = sbr.rel (!%p13_p6) target bundleno = 5 (0x5), region = 68 }
 0x13c   :  { %513 = vsyncpa [#allocation3], 1 }
 0x13d   :  { %515 = vsyncpa [#allocation3 + $0x1], 1 }

</bundles_post_ra>
